<compile_context>
chip_gen: v7x
topology: tpu7x:2x2x1
jax: 0.10.0
libtpu: 0.0.40
codegen_flags: <defaults>
</compile_context>

<pallas_src>
import functools

import jax
import jax.numpy as jnp
from jax.experimental import pallas as pl
from jax.experimental.pallas import tpu as pltpu

EPS = 1e-5


# --------------------------------------------------------------------------- #
# Kernels
# --------------------------------------------------------------------------- #
def _band_conv_stats(v, a_ref, b_ref, h_ref, s_ref):
    """v: (rows, K) fused-lane activations of one image.

    3x3 conv = three accumulating 2-D MXU matmuls against the per-ky banded
    weight (un-batched RHS, static slices, no concat).  Writes the conv output
    and the per-image [sum ; sum_sq] lane rows used for the BatchNorm pass.
    """
    h_out = h_ref.shape[0]
    acc = jnp.dot(v[0:h_out, :], a_ref[0], preferred_element_type=jnp.float32)
    for ky in (1, 2):
        acc = acc + jnp.dot(v[ky:ky + h_out, :], a_ref[ky],
                            preferred_element_type=jnp.float32)
    h = acc + b_ref[...]
    h_ref[...] = h
    s_ref[0:1, :] = jnp.sum(h, axis=0, keepdims=True)
    s_ref[1:2, :] = jnp.sum(h * h, axis=0, keepdims=True)


def _conv1_kernel(x_ref, a_ref, b_ref, h_ref, s_ref):
    # pass 1: conv1 + BN1 partial sums (one image per grid step)
    _band_conv_stats(x_ref[...], a_ref, b_ref, h_ref, s_ref)


def _bn_conv_kernel(v_ref, ss_ref, a_ref, b_ref, h_ref, s_ref):
    # pass 2: BN1 apply + ReLU (fused scale/shift) + conv2 + BN2 partial sums
    v = jnp.maximum(v_ref[...] * ss_ref[0:1, :] + ss_ref[1:2, :], 0.0)
    _band_conv_stats(v, a_ref, b_ref, h_ref, s_ref)


def _bn_pool_kernel(hp_ref, ss_ref, psel_ref, o_ref, *, cout, l2):
    """pass 3: BN2 apply + ReLU + MaxPool2d(2,2).

    hp_ref packs the two rows of each y-pool pair into lanes:
    (Hp, 2*L2p) with lane halves [row 2p | row 2p+1], so the y-direction max is
    a lane-slice max (no row selection matmul, no strided access).
    """
    l2p = ss_ref.shape[1]
    scale, shift = ss_ref[0:1, :], ss_ref[1:2, :]
    ev = jnp.maximum(hp_ref[:, :l2p] * scale + shift, 0.0)        # rows 2p
    od = jnp.maximum(hp_ref[:, l2p:] * scale + shift, 0.0)        # rows 2p+1
    yp = jnp.maximum(ev, od)                                      # y-pool
    xm = jnp.maximum(yp[:, :l2 - cout], yp[:, cout:l2])           # x pairwise max
    o_ref[...] = jnp.dot(xm, psel_ref[...],                       # even-x select
                         preferred_element_type=jnp.float32)      # lane-dense store


# --------------------------------------------------------------------------- #
# Wrapper-side operand construction (weights / selections / BN glue)
# --------------------------------------------------------------------------- #
def _round_up(v, m):
    return (v + m - 1) // m * m


def _band_weights(w_oihw, w_in, k_pad, n_pad):
    """PyTorch conv weight (Cout, Cin, 3, 3) -> (3, k_pad, n_pad) per-ky banded
    weights for the fused-lane layout (lane index = x*C + c), zero-padded to
    lane-aligned K/N."""
    cout, cin = w_oihw.shape[0], w_oihw.shape[1]
    w_out = w_in - 2
    k, n = w_in * cin, w_out * cout
    blocks = []
    for ky in range(3):
        a = jnp.zeros((k, n), jnp.float32)
        for kx in range(3):
            shift = jnp.eye(w_in, w_out, k=-kx, dtype=jnp.float32)  # xi == xo+kx
            a = a + jnp.kron(shift, w_oihw[:, :, ky, kx].T.astype(jnp.float32))
        blocks.append(jnp.pad(a, ((0, k_pad - k), (0, n_pad - n))))
    return jnp.stack(blocks, axis=0)


def _bn_scale_shift(lane_sums, count, gamma, beta, w_real, l_pad):
    """(2, l_pad) batch-summed [sum ; sum_sq] lane rows -> (2, l_pad) lane-expanded
    BatchNorm scale (row 0) / shift (row 1).  O(C) work, done once per BN."""
    cout = gamma.shape[0]
    ch = lane_sums[:, :w_real * cout].reshape(2, w_real, cout).sum(axis=1)
    mean = ch[0] / count
    # TODO(synk): single-pass variance; switch to two-pass/Welford when tiling.
    var = ch[1] / count - mean * mean
    scale = gamma * jax.lax.rsqrt(var + EPS)
    shift = beta - mean * scale
    ss = jnp.stack([jnp.tile(scale, w_real), jnp.tile(shift, w_real)], axis=0)
    return jnp.pad(ss, ((0, 0), (0, l_pad - w_real * cout)))


def encoder_block_forward(x_nchw, params):
    """PyTorch-equivalent forward.  x_nchw: (N, Cin, H, W) f32 -> (N, Cout, Hp, Wp)."""
    N, Cin, H, W = x_nchw.shape
    Cout = params["w1"].shape[0]
    H1, W1 = H - 2, W - 2
    H2, W2 = H1 - 2, W1 - 2
    assert H2 % 2 == 0 and W2 % 2 == 0, "MaxPool2d(2,2) expects even H-4, W-4"
    Hp, Wp = H2 // 2, W2 // 2
    Kin = W * Cin
    L1, L2, Lp = W1 * Cout, W2 * Cout, Wp * Cout
    L1p, L2p, Lpp = _round_up(L1, 128), _round_up(L2, 128), _round_up(Lp, 128)

    f32 = jnp.float32
    # NCHW -> fused-lane NHWC: (N, H, W*Cin); lane index = x*Cin + ci.
    x_f = jnp.transpose(x_nchw, (0, 2, 3, 1)).astype(f32).reshape(N, H, Kin)

    a1 = _band_weights(params["w1"], W, Kin, L1p)     # (3, Kin, L1p)
    a2 = _band_weights(params["w2"], W1, L1p, L2p)    # (3, L1p, L2p), K = 128
    b1 = jnp.pad(jnp.tile(params["b1"].astype(f32), W1), (0, L1p - L1)).reshape(1, L1p)
    b2 = jnp.pad(jnp.tile(params["b2"].astype(f32), W2), (0, L2p - L2)).reshape(1, L2p)

    # Exact 0/1 even-x selection for the pool, padded to a lane-dense output.
    eye = jnp.eye(Cout, dtype=f32)
    even_x = jnp.zeros((W2 - 1, Wp), f32).at[2 * jnp.arange(Wp),
                                             jnp.arange(Wp)].set(1.0)
    psel = jnp.pad(jnp.kron(even_x, eye), ((0, 0), (0, Lpp - Lp)))  # (L2-Cout, Lpp)

    parallel = pltpu.CompilerParams(dimension_semantics=("parallel",))

    # ---- pass 1: conv1 + per-image BN1 partial sums ------------------------
    h1, sums1 = pl.pallas_call(
        _conv1_kernel,
        out_shape=(jax.ShapeDtypeStruct((N, H1, L1p), f32),
                   jax.ShapeDtypeStruct((N, 2, L1p), f32)),
        grid=(N,),
        in_specs=[pl.BlockSpec((None, H, Kin), lambda n: (n, 0, 0)),
                  pl.BlockSpec((3, Kin, L1p), lambda n: (0, 0, 0)),
                  pl.BlockSpec((1, L1p), lambda n: (0, 0))],
        out_specs=(pl.BlockSpec((None, H1, L1p), lambda n: (n, 0, 0)),
                   pl.BlockSpec((None, 2, L1p), lambda n: (n, 0, 0))),
        compiler_params=parallel,
    )(x_f, a1, b1)
    ss1 = _bn_scale_shift(sums1.sum(axis=0), N * H1 * W1,
                          params["g1"].astype(f32), params["be1"].astype(f32),
                          W1, L1p)

    # ---- pass 2: BN1 + ReLU + conv2 + per-image BN2 partial sums -----------
    h2, sums2 = pl.pallas_call(
        _bn_conv_kernel,
        out_shape=(jax.ShapeDtypeStruct((N, H2, L2p), f32),
                   jax.ShapeDtypeStruct((N, 2, L2p), f32)),
        grid=(N,),
        in_specs=[pl.BlockSpec((None, H1, L1p), lambda n: (n, 0, 0)),
                  pl.BlockSpec((2, L1p), lambda n: (0, 0)),
                  pl.BlockSpec((3, L1p, L2p), lambda n: (0, 0, 0)),
                  pl.BlockSpec((1, L2p), lambda n: (0, 0))],
        out_specs=(pl.BlockSpec((None, H2, L2p), lambda n: (n, 0, 0)),
                   pl.BlockSpec((None, 2, L2p), lambda n: (n, 0, 0))),
        compiler_params=parallel,
    )(h1, ss1, a2, b2)
    ss2 = _bn_scale_shift(sums2.sum(axis=0), N * H2 * W2,
                          params["g2"].astype(f32), params["be2"].astype(f32),
                          W2, L2p)

    # ---- pass 3: BN2 + ReLU + MaxPool2d(2,2) --------------------------------
    # Pack each y-pool row pair into lanes (free row-major reshape of the HBM
    # array between calls) so the kernel needs no row selection at all.
    h2_pairs = h2.reshape(N, Hp, 2 * L2p)
    out_p = pl.pallas_call(
        functools.partial(_bn_pool_kernel, cout=Cout, l2=L2),
        out_shape=jax.ShapeDtypeStruct((N, Hp, Lpp), f32),
        grid=(N,),
        in_specs=[pl.BlockSpec((None, Hp, 2 * L2p), lambda n: (n, 0, 0)),
                  pl.BlockSpec((2, L2p), lambda n: (0, 0)),
                  pl.BlockSpec((L2 - Cout, Lpp), lambda n: (0, 0))],
        out_specs=pl.BlockSpec((None, Hp, Lpp), lambda n: (n, 0, 0)),
        compiler_params=parallel,
    )(h2_pairs, ss2, psel)

    # Strip lane padding, fused-lane -> NCHW (wrapper-side layout plumbing).
    out = out_p[:, :, :Lp].reshape(N, Hp, Wp, Cout)
    return jnp.transpose(out, (0, 3, 1, 2))


# --------------------------------------------------------------------------- #
# Pure-JAX reference of the PyTorch module + test harness
# --------------------------------------------------------------------------- #
def encoder_block_reference(x_nchw, params):
    def conv(x, w, b):
        y = jax.lax.conv_general_dilated(
            x, w, window_strides=(1, 1), padding="VALID",
            dimension_numbers=("NCHW", "OIHW", "NCHW"))
        return y + b[None, :, None, None]

    def bn_relu(x, g, be):
        mean = x.mean(axis=(0, 2, 3), keepdims=True)
        var = ((x - mean) ** 2).mean(axis=(0, 2, 3), keepdims=True)
        y = (x - mean) * jax.lax.rsqrt(var + EPS) * g[None, :, None, None] \
            + be[None, :, None, None]
        return jnp.maximum(y, 0.0)

    h = bn_relu(conv(x_nchw, params["w1"], params["b1"]), params["g1"], params["be1"])
    h = bn_relu(conv(h, params["w2"], params["b2"]), params["g2"], params["be2"])
    return jax.lax.reduce_window(h, -jnp.inf, jax.lax.max,
                                 (1, 1, 2, 2), (1, 1, 2, 2), "VALID")


def make_params(key, in_channels, out_channels):
    ks = jax.random.split(key, 8)
    f32 = jnp.float32
    return {
        "w1": 0.2 * jax.random.normal(ks[0], (out_channels, in_channels, 3, 3), f32),
        "b1": 0.1 * jax.random.normal(ks[1], (out_channels,), f32),
        "g1": 1.0 + 0.1 * jax.random.normal(ks[2], (out_channels,), f32),
        "be1": 0.1 * jax.random.normal(ks[3], (out_channels,), f32),
        "w2": 0.2 * jax.random.normal(ks[4], (out_channels, out_channels, 3, 3), f32),
        "b2": 0.1 * jax.random.normal(ks[5], (out_channels,), f32),
        "g2": 1.0 + 0.1 * jax.random.normal(ks[6], (out_channels,), f32),
        "be2": 0.1 * jax.random.normal(ks[7], (out_channels,), f32),
    }


if __name__ == "__main__":
    key = jax.random.PRNGKey(0)
    k_x, k_p = jax.random.split(key)

    N, Cin, Cout, H, W = 2, 4, 8, 16, 16
    x = jax.random.normal(k_x, (N, Cin, H, W), jnp.float32)
    params = make_params(k_p, Cin, Cout)

    out = jax.block_until_ready(encoder_block_forward(x, params))
    ref = jax.block_until_ready(encoder_block_reference(x, params))

    assert out.shape == (N, Cout, (H - 4) // 2, (W - 4) // 2), out.shape
    assert jnp.allclose(out, ref, rtol=1e-4, atol=1e-4), \
        float(jnp.max(jnp.abs(out - ref)))
    print("KERNEL_OK")
</pallas_src>

<mosaic_0001>
module attributes {stable_mosaic.version = 11 : i64} {
  func.func @_conv1_kernel(%arg0: i32, %arg1: memref<1x16x64xf32, #tpu.memory_space<vmem>>, %arg2: memref<3x64x128xf32, #tpu.memory_space<vmem>>, %arg3: memref<1x128xf32, #tpu.memory_space<vmem>>, %arg4: memref<1x14x128xf32, #tpu.memory_space<vmem>>, %arg5: memref<1x2x128xf32, #tpu.memory_space<vmem>>) attributes {dimension_semantics = [#tpu.dimension_semantics<parallel>], iteration_bounds = array<i64: 2>, scalar_prefetch = 0 : i64, scratch_operands = 0 : i64, tpu.core_type = #tpu.core_type<tc>, window_params = [{transform_indices = @transform_0, window_bounds = array<i64: 1, 16, 64>}, {pipeline_mode = #tpu.pipeline_mode<synchronous>, transform_indices = @transform_1, window_bounds = array<i64: 3, 64, 128>}, {pipeline_mode = #tpu.pipeline_mode<synchronous>, transform_indices = @transform_2, window_bounds = array<i64: 1, 128>}, {transform_indices = @transform_3, window_bounds = array<i64: 1, 14, 128>}, {transform_indices = @transform_4, window_bounds = array<i64: 1, 2, 128>}]} {
    %c0 = arith.constant 0 : index
    %c0_0 = arith.constant 0 : index
    %c0_1 = arith.constant 0 : index
    %0 = vector.load %arg1[%c0, %c0_0, %c0_1] : memref<1x16x64xf32, #tpu.memory_space<vmem>>, vector<1x16x64xf32>
    %1 = vector.shape_cast %0 : vector<1x16x64xf32> to vector<16x64xf32>
    %2 = vector.extract_strided_slice %1 {offsets = [0, 0], sizes = [14, 64], strides = [1, 1]} : vector<16x64xf32> to vector<14x64xf32>
    %c0_2 = arith.constant 0 : index
    %c0_3 = arith.constant 0 : index
    %c0_4 = arith.constant 0 : index
    %3 = vector.load %arg2[%c0_2, %c0_3, %c0_4] : memref<3x64x128xf32, #tpu.memory_space<vmem>>, vector<1x64x128xf32>
    %4 = vector.shape_cast %3 : vector<1x64x128xf32> to vector<64x128xf32>
    %cst = arith.constant dense<0.000000e+00> : vector<14x128xf32>
    %5 = tpu.matmul %2, %4, %cst {dimension_numbers = #tpu.dot_dimension_numbers<[1], [0], [0], [1], [0, 0, 1, 1], [], []>} : vector<14x64xf32>, vector<64x128xf32>, vector<14x128xf32> -> vector<14x128xf32>
    %6 = vector.extract_strided_slice %1 {offsets = [1, 0], sizes = [14, 64], strides = [1, 1]} : vector<16x64xf32> to vector<14x64xf32>
    %c1 = arith.constant 1 : index
    %c0_5 = arith.constant 0 : index
    %c0_6 = arith.constant 0 : index
    %7 = vector.load %arg2[%c1, %c0_5, %c0_6] : memref<3x64x128xf32, #tpu.memory_space<vmem>>, vector<1x64x128xf32>
    %8 = vector.shape_cast %7 : vector<1x64x128xf32> to vector<64x128xf32>
    %cst_7 = arith.constant dense<0.000000e+00> : vector<14x128xf32>
    %9 = tpu.matmul %6, %8, %cst_7 {dimension_numbers = #tpu.dot_dimension_numbers<[1], [0], [0], [1], [0, 0, 1, 1], [], []>} : vector<14x64xf32>, vector<64x128xf32>, vector<14x128xf32> -> vector<14x128xf32>
    %10 = arith.addf %5, %9 : vector<14x128xf32>
    %11 = vector.extract_strided_slice %1 {offsets = [2, 0], sizes = [14, 64], strides = [1, 1]} : vector<16x64xf32> to vector<14x64xf32>
    %c2 = arith.constant 2 : index
    %c0_8 = arith.constant 0 : index
    %c0_9 = arith.constant 0 : index
    %12 = vector.load %arg2[%c2, %c0_8, %c0_9] : memref<3x64x128xf32, #tpu.memory_space<vmem>>, vector<1x64x128xf32>
    %13 = vector.shape_cast %12 : vector<1x64x128xf32> to vector<64x128xf32>
    %cst_10 = arith.constant dense<0.000000e+00> : vector<14x128xf32>
    %14 = tpu.matmul %11, %13, %cst_10 {dimension_numbers = #tpu.dot_dimension_numbers<[1], [0], [0], [1], [0, 0, 1, 1], [], []>} : vector<14x64xf32>, vector<64x128xf32>, vector<14x128xf32> -> vector<14x128xf32>
    %15 = arith.addf %10, %14 : vector<14x128xf32>
    %c0_11 = arith.constant 0 : index
    %c0_12 = arith.constant 0 : index
    %16 = vector.load %arg3[%c0_11, %c0_12] : memref<1x128xf32, #tpu.memory_space<vmem>>, vector<1x128xf32>
    %17 = vector.broadcast %16 : vector<1x128xf32> to vector<14x128xf32>
    %18 = arith.addf %15, %17 : vector<14x128xf32>
    %c0_13 = arith.constant 0 : index
    %c0_14 = arith.constant 0 : index
    %c0_15 = arith.constant 0 : index
    %19 = vector.load %arg4[%c0_13, %c0_14, %c0_15] : memref<1x14x128xf32, #tpu.memory_space<vmem>>, vector<1x14x128xf32>
    %20 = vector.shape_cast %19 : vector<1x14x128xf32> to vector<14x128xf32>
    %21 = vector.shape_cast %18 : vector<14x128xf32> to vector<1x14x128xf32>
    tpu.vector_store %arg4[%c0_13, %c0_14, %c0_15], %21 {strides = array<i32>} : memref<1x14x128xf32, #tpu.memory_space<vmem>>, vector<1x14x128xf32>,
    %cst_16 = arith.constant dense<0.000000e+00> : vector<128xf32>
    %22 = vector.multi_reduction <add>, %18, %cst_16 [0] : vector<14x128xf32> to vector<128xf32>
    %23 = vector.shape_cast %22 : vector<128xf32> to vector<1x128xf32>
    %c0_17 = arith.constant 0 : index
    %c0_18 = arith.constant 0 : index
    %c0_19 = arith.constant 0 : index
    %24 = vector.load %arg5[%c0_17, %c0_18, %c0_19] : memref<1x2x128xf32, #tpu.memory_space<vmem>>, vector<1x1x128xf32>
    %25 = vector.shape_cast %24 : vector<1x1x128xf32> to vector<1x128xf32>
    %26 = vector.shape_cast %23 : vector<1x128xf32> to vector<1x1x128xf32>
    tpu.vector_store %arg5[%c0_17, %c0_18, %c0_19], %26 {strides = array<i32>} : memref<1x2x128xf32, #tpu.memory_space<vmem>>, vector<1x1x128xf32>,
    %27 = arith.mulf %18, %18 : vector<14x128xf32>
    %cst_20 = arith.constant dense<0.000000e+00> : vector<128xf32>
    %28 = vector.multi_reduction <add>, %27, %cst_20 [0] : vector<14x128xf32> to vector<128xf32>
    %29 = vector.shape_cast %28 : vector<128xf32> to vector<1x128xf32>
    %c0_21 = arith.constant 0 : index
    %c1_22 = arith.constant 1 : index
    %c0_23 = arith.constant 0 : index
    %30 = vector.load %arg5[%c0_21, %c1_22, %c0_23] : memref<1x2x128xf32, #tpu.memory_space<vmem>>, vector<1x1x128xf32>
    %31 = vector.shape_cast %30 : vector<1x1x128xf32> to vector<1x128xf32>
    %32 = vector.shape_cast %29 : vector<1x128xf32> to vector<1x1x128xf32>
    tpu.vector_store %arg5[%c0_21, %c1_22, %c0_23], %32 {strides = array<i32>} : memref<1x2x128xf32, #tpu.memory_space<vmem>>, vector<1x1x128xf32>,
    return
  }
  func.func @transform_0(%arg0: i32) -> (i32, i32, i32) {
    %c0_i32 = arith.constant 0 : i32
    %c0_i32_0 = arith.constant 0 : i32
    %c0_i32_1 = arith.constant 0 : i32
    return %arg0, %c0_i32, %c0_i32_0 : i32, i32, i32
  }
  func.func @transform_1(%arg0: i32) -> (i32, i32, i32) {
    %c0_i32 = arith.constant 0 : i32
    %c0_i32_0 = arith.constant 0 : i32
    %c0_i32_1 = arith.constant 0 : i32
    %c0_i32_2 = arith.constant 0 : i32
    return %c0_i32, %c0_i32_0, %c0_i32_1 : i32, i32, i32
  }
  func.func @transform_2(%arg0: i32) -> (i32, i32) {
    %c0_i32 = arith.constant 0 : i32
    %c0_i32_0 = arith.constant 0 : i32
    %c0_i32_1 = arith.constant 0 : i32
    return %c0_i32, %c0_i32_0 : i32, i32
  }
  func.func @transform_3(%arg0: i32) -> (i32, i32, i32) {
    %c0_i32 = arith.constant 0 : i32
    %c0_i32_0 = arith.constant 0 : i32
    %c0_i32_1 = arith.constant 0 : i32
    return %arg0, %c0_i32, %c0_i32_0 : i32, i32, i32
  }
  func.func @transform_4(%arg0: i32) -> (i32, i32, i32) {
    %c0_i32 = arith.constant 0 : i32
    %c0_i32_0 = arith.constant 0 : i32
    %c0_i32_1 = arith.constant 0 : i32
    return %arg0, %c0_i32, %c0_i32_0 : i32, i32, i32
  }
}

</mosaic_0001>

<bundles_post_ra>
// kernel: tpu_custom_call.1
= control target key start
LH: loop header
LB: loop body
LE: loop exit
PB: predicated region body
PF: predicated region fallthrough
CT: control target
= control target key end

     0   :  { %10 = vsyncpa [#allocation3], 0  ;;  %s1287_s0 = inlined_call_operand.hbm [shape: f32[2,16,64], index: 0, kind: input, shape index: {}]   ;;  %s1288_s1 = inlined_call_operand.hbm [shape: f32[3,64,128], index: 1, kind: input, shape index: {}]   ;;  %s1289_s2 = inlined_call_operand.vmem [shape: f32[1,128], index: 2, kind: input, shape index: {}]   ;;  %s1290_s3 = inlined_call_operand.vmem [shape: f32[2,14,128], index: 3, kind: output, shape index: {0}]   ;;  %s1291_s4 = inlined_call_operand.hbm [shape: f32[2,2,128], index: 4, kind: output, shape index: {1}]  }
   0x1   :  { %12 = vsyncpa [#allocation3 + $0x1], 0 }
   0x2   :  { %13 = vsyncpa [#allocation6], 0 }
   0x3   :  { %14 = vsyncpa [#allocation4], 0 }
   0x4   :  { %16 = vsyncpa [#allocation4 + $0x1], 0  ;;  %s1064_s15 = smov 0   ;;  %s1066_s16 = smov 0  }
   0x5   :  { %s1068_s17 = smov 0   ;;  %s1070_s18 = smov 0  }
   0x6 LB: > { %s1085_s19 = sadd.s32 4294967295, %s1032_s18   ;;  %s680_s20 = sadd.s32 4294967294, %s1032_s18   ;;  %s1032_s18 = sphi %s1070_s18, %s1311_s18   ;;  %s1028_s17 = sphi %s1068_s17, %s1310_s17   ;;  %s1024_s16 = sphi %s1066_s16, %s1309_s16   ;;  %s1020_s15 = sphi %s1064_s15, %s1308_s15  }
   0x7   : > { %p42_p0 = scmp.ne.s32.totalorder %s1024_s16, %s1020_s15  ;;  %p1292_p1 = scmp.eq.s32.totalorder %s1085_s19, 0 }
   0x8   : > { %p140_p3 = scmp.eq.s32.totalorder %s680_s20, 1  ;;  %p681_p5 = scmp.ge.s32.totalorder %s1032_s18, 1 }
   0x9   : > { %p1094_p4 = por %p1292_p1, %p42_p0  ;;  %p147_p7 = scmp.lt.s32.totalorder %s1032_s18, 3 }
   0xa   : > { %p1099_p6 = por %p140_p3, %p42_p0  ;;  %s1034_s24 = smov [#allocation5]  }
   0xb   : > { %s1295_s21 = scalar_select %p1094_p4, 1, 0 }
   0xc   : > { %s1296_s22 = scalar_select %p1099_p6, 1, 0 }
   0xd   : > { %p1104_p8 = pnand %p681_p5, %p147_p7  ;;  %s159_s25 = sshll.u32 %s1034_s24, 4  ;;  %s1108_s25 = int_to_ptr.vmem [resolvable:$true] %s159_s25 }
   0xe   : > { %s1120_s27 = sadd.s32 1, %s1032_s18   ;;  %s29_s28 = sadd.s32 1, %s1028_s17 }
   0xf   : > { %s1297_s23 = scalar_select %p1104_p8, 1, 0 }
  0x10   : > { %p853_p9 = pneg %p1104_p8  ;;  %s26_s29 = ssub.s32 %s1032_s18, %s1120_s27 }
  0x11   : > { %s904_s6 = scalar_lea.hbm %s1288_s1, 3072 }
  0x12   : > { %p1115_p11 = pnand %p853_p9, %p1292_p1  ;;  %p905_p12 = scmp.ne.s32.totalorder %s1288_s1, %s904_s6 }
  0x13   : > { %p911_p5 = scmp.lt.u32.totalorder %s904_s6, %s1288_s1 }
  0x14   : > { %p906_p13 = pneg %p1115_p11 }
  0x16   : > { %p907_p0 = pnand %p906_p13, %p905_p12 }
  0x18   : > { %p908_p3 = pneg %p907_p0 }
  0x1a   : > { %p913_p7 = pnand %p911_p5, %p908_p3 }
  0x1c   : > { %916 = shalt.err (!%p913_p7)
}
  0x1d   : > { %s917_s11 = scalar_lea.vmem %s1108_s25, 3072  ;;  %p925_p2 = scmp.lt.s32.totalorder %s1108_s25, %s1108_s25 }
  0x1e   : > { %p918_p9 = scmp.ne.s32.totalorder %s1108_s25, %s917_s11  ;;  %p926_p6 = scmp.lt.s32.totalorder %s917_s11, %s917_s11 }
  0x20   : > { %p920_p10 = pnand %p918_p9, %p906_p13  ;;  %p927_p4 = por %p926_p6, %p925_p2 }
  0x22   : > { %p921_p1 = pneg %p920_p10 }
  0x24   : > { %p928_p8 = pnand %p927_p4, %p921_p1 }
  0x26   : > { %931 = shalt.err (!%p928_p8)
}
  0x27   : > { %s1035_s12 = smov 128   ;;  %s1036_s13 = smov 8  }
  0x28   : > { %856 = dma.hbm_to_vmem [thread:$0]  (!%p1115_p11), %s1288_s1, 3072, %s1108_s25, [#allocation6], %s1035_s12, %s1035_s12, %s1036_s13  }
  0x29   : > { %p27_p1 = scmp.eq.s32.totalorder %s26_s29, 0  ;;  %p36_p2 = scmp.ne.s32.totalorder %s1028_s17, %s1024_s16 }
  0x2a   : > { %p37_p4 = scmp.eq.s32.totalorder %s1032_s18, 0  ;;  %p866_p6 = scmp.lt.s32.totalorder %s1032_s18, 2 }
  0x2b   : > { %s1154_s24 = scalar_select %p27_p1, %s1028_s17, %s29_s28  }
  0x2c   : > { %p38_p8 = por %p37_p4, %p36_p2  ;;  %p1299_p10 = scmp.eq.s32.totalorder %s1085_s19, 1 }
  0x2d   : > { %s176_s26 = sand.u32 1, %s1028_s17   ;;  %s704_s5 = sshll.u32 %s1032_s18, 8 }
  0x2e   : > { %p1158_p12 = por %p1299_p10, %p36_p2  ;;  %s684_s6 = sshll.u32 %s176_s26, 4 }
  0x2f   : > { %s1167_s9 = scalar_lea.hbm %s1287_s0, %s704_s5  ;;  %s180_s25 = scalar_lea.vmem [#allocation2], %s684_s6 }
  0x30   : > { %s187_s28 = sshll.u32 %s180_s25, 4  ;;  %p1169_p11 = pnand %p866_p6, %p38_p8  ;;  %s1173_s28 = int_to_ptr.vmem [resolvable:$true] %s187_s28 }
  0x31   : > { %s1175_s10 = scalar_lea.sflag [#allocation3], %s176_s26  ;;  %s932_s11 = scalar_lea.hbm %s1167_s9, 256 }
  0x32   : > { %p933_p13 = scmp.ne.s32.totalorder %s1167_s9, %s932_s11  ;;  %p934_p0 = pneg %p1169_p11 }
  0x33   : > { %s937_s5 = scalar_lea.hbm %s1287_s0, 512  ;;  %p938_p7 = scmp.lt.u32.totalorder %s1167_s9, %s1287_s0 }
  0x34   : > { %p935_p3 = pnand %p934_p0, %p933_p13  ;;  %p939_p9 = scmp.lt.u32.totalorder %s937_s5, %s932_s11 }
  0x35   : > { %p941_p2 = scmp.lt.u32.totalorder %s932_s11, %s1167_s9 }
  0x36   : > { %p936_p5 = pneg %p935_p3  ;;  %p940_p1 = por %p939_p9, %p938_p7 }
  0x38   : > { %p942_p4 = por %p941_p2, %p940_p1 }
  0x3a   : > { %p943_p6 = pnand %p942_p4, %p936_p5 }
  0x3c   : > { %946 = shalt.err (!%p943_p6)
}
  0x3d   : > { %s947_s26 = scalar_lea.vmem %s1173_s28, 256  ;;  %s1037_s8 = smov [#allocation2]  }
  0x3e   : > { %p948_p8 = scmp.ne.s32.totalorder %s1173_s28, %s947_s26  ;;  %s952_s25 = sshll.u32 %s1037_s8, 4  ;;  %s953_s25 = int_to_ptr.vmem [resolvable:$false] %s952_s25 }
  0x3f   : > { %s954_s14 = scalar_lea.vmem %s953_s25, 512  ;;  %p955_p3 = scmp.lt.s32.totalorder %s1173_s28, %s953_s25 }
  0x40   : > { %p950_p10 = pnand %p948_p8, %p934_p0  ;;  %p956_p7 = scmp.lt.s32.totalorder %s954_s14, %s947_s26 }
  0x42   : > { %p951_p13 = pneg %p950_p10  ;;  %p957_p9 = por %p956_p7, %p955_p3 }
  0x44   : > { %p958_p1 = pnand %p957_p9, %p951_p13 }
  0x46   : > { %961 = shalt.err (!%p958_p1)
}
  0x47   : > { %860 = dma.hbm_to_vmem [thread:$0]  (!%p1169_p11), %s1167_s9, 256, %s1173_s28, %s1175_s10, %s1035_s12, %s1035_s12, %s1036_s13  }
  0x48   : > { %p1302_p0 = scmp.ne.s32.totalorder %s1297_s23, 0 }
  0x49   : > { %s1209_s11 = sand.u32 (!%p1302_p0), 1, %s1024_s16   ;;  %p1303_p5 = scmp.ne.s32.totalorder (!%p1302_p0), %s1295_s21, 0 }
  0x4a   : > { %199 = sbr.rel (%p1302_p0) target bundleno = 367 (0x16f), region = 32  ;;  %s688_s20 = sshll.u32 (!%p1302_p0), %s1209_s11, 4 }
  0x4b   : > { %s202_s5 = scalar_lea.sflag (!%p1302_p0), [#allocation3], %s1209_s11  ;;  %s205_s6 = scalar_lea.vmem (!%p1302_p0), [#allocation2], %s688_s20 }
  0x51   : > { %1007 = dma.done.wait (%p1303_p5), %s202_s5, 256  }
  0x52   : > { %1009 = vsyncadd (%p1303_p5), %s202_s5, 4294967040  ;;  %p1304_p2 = scmp.eq.s32.totalorder %s1085_s19, 0 }
  0x54   : > { %1011 = dma.done.wait (%p1304_p2), [#allocation6], 3072   ;;  %p1305_p11 = pmov %p1304_p2 }
  0x55   : > { %v246_v0 = vld [vmem:[#allocation5] sm:$0xff]  ;;  %v247_v1 = vld [vmem:[#allocation5 + $0x8] sm:$0xff]  ;;  %v248_v2 = vld [vmem:[#allocation5 + $0x10] sm:$0xff]  ;;  %vm269_vm0 = vcmask 523264   ;;  %vm265_vm1 = vcmask 1046528   ;;  %vm437_vm2 = vcmask 1045504  }
  0x56   : > { %1013 = vsyncadd (%p1305_p11), [#allocation6], 4294964224  ;;  %v809_v3 = vpack.c.bf16 %v247_v1, %v246_v0  ;;  %v249_v4 = vld [vmem:[#allocation5 + $0x18] sm:$0xff]  ;;  %v250_v6 = vld [vmem:[#allocation5 + $0x20] sm:$0xff]  ;;  %p239_p4 = scmp.lt.s32.totalorder %s1085_s19, 1  ;;  %s690_s10 = sshll.u32 %s1209_s11, 1 }
  0x57   : > { %v813_v5 = vpack.c.bf16 %v249_v4, %v248_v2  ;;  %v251_v7 = vld [vmem:[#allocation5 + $0x28] sm:$0xff]  ;;  %v255_v8 = vld [vmem:[#allocation5 + $0x40] sm:$0xff]  ;;  %v257_v14 = vld [vmem:[#allocation5 + $0x50] sm:$0xff]  ;;  %s701_s7 = sshll.u32 %s1085_s19, 5  ;;  %s238_s26 = scalar_lea.vmem [#allocation7], %s690_s10 }
  0x58   : > { %810 = vmatprep.subr.bf16.mxu0 %v809_v3  ;;  %v256_v9 = vld [vmem:[#allocation5 + $0x48] sm:$0xff]  ;;  %v244_v10 = vld [vmem:[%s205_s6] sm:$0xff]  ;;  %v817_v15 = vpack.c.bf16 %v251_v7, %v250_v6  ;;  %v258_v17 = vld [vmem:[#allocation5 + $0x58] sm:$0xff]  ;;  %s240_s21 = scalar_select %p239_p4, %s1085_s19, 1 }
  0x59   : > { %812 = vmatpush3.bf16.msra.mxu0 %v809_v3  ;;  %v793_v11 = vpack.c.bf16 %v256_v9, %v255_v8  ;;  %v266_v12 = vrot.slane %v244_v10, 1  ;;  %771 = vmatprep.mubr.msk.f32.mxu0 %vm269_vm0, %v244_v10  ;;  %v245_v13 = vld [vmem:[%s205_s6 + $0x8] sm:$0xff]  ;;  %v252_v16 = vld [vmem:[#allocation5 + $0x30] sm:$0xff]  ;;  %v797_v20 = vpack.c.bf16 %v258_v17, %v257_v14  ;;  %v259_v21 = vld [vmem:[#allocation5 + $0x60] sm:$0xff]  ;;  %v438_v31 = vrot.slane %v244_v10, 2  ;;  %s575_s8 = sshll.u32 %s238_s26, 4  ;;  %s1243_s20 = scalar_lea.hbm %s1291_s4, %s701_s7  ;;  %s1245_s8 = int_to_ptr.vmem [resolvable:$true] %s575_s8 }
  0x5a   : > { %814 = vmatprep.subr.bf16.mxu0 %v813_v5  ;;  %v267_v18 = vrot.slane %v245_v13, 1  ;;  %v253_v19 = vld [vmem:[#allocation5 + $0x38] sm:$0xff]  ;;  %v260_v22 = vld [vmem:[#allocation5 + $0x68] sm:$0xff]  ;;  %v261_v26 = vld [vmem:[#allocation5 + $0x70] sm:$0xff]  ;;  %v439_v33 = vrot.slane %v245_v13, 2  ;;  %s705_s23 = sshll.u32 %s240_s21, 4 }
  0x5b   : > { %794 = vmatprep.subr.bf16.mxu1 %v793_v11  ;;  %v801_v24 = vpack.c.bf16 %v260_v22, %v259_v21  ;;  %v821_v25 = vpack.c.bf16 %v253_v19, %v252_v16  ;;  %v262_v27 = vld [vmem:[#allocation5 + $0x78] sm:$0xff]  ;;  %v429_v28 = vld [vmem:[#allocation5 + $0x80] sm:$0xff]  ;;  %v430_v29 = vld [vmem:[#allocation5 + $0x88] sm:$0xff]  ;;  %s243_s29 = scalar_lea.vmem %s1290_s3, %s705_s23  ;;  %s559_s5 = scalar_lea.sflag [#allocation4], %s1209_s11 }
  0x5c   : > { %796 = vmatpush3.bf16.msra.mxu1 %v793_v11  ;;  %v268_v23 = vsel %vm265_vm1, %v266_v12, %v267_v18  ;;  %v805_v30 = vpack.c.bf16 %v262_v27, %v261_v26  ;;  %v825_v32 = vpack.c.bf16 %v430_v29, %v429_v28  ;;  %v431_v34 = vld [vmem:[#allocation5 + $0x90] sm:$0xff]  ;;  %v432_v35 = vld [vmem:[#allocation5 + $0x98] sm:$0xff]  ;;  %v440_v37 = vsel %vm437_vm2, %v438_v31, %v439_v33  ;;  %v433_v38 = vld [vmem:[#allocation5 + $0xa0] sm:$0xff]  ;;  %s962_s6 = scalar_lea.vmem %s1245_s8, 32  ;;  %s1038_s19 = smov [#allocation7]  }
  0x5d   : > { %816 = vmatpush3.bf16.msra.mxu0 %v813_v5  ;;  %798 = vmatprep.subr.bf16.mxu1 %v797_v20  ;;  %v829_v36 = vpack.c.bf16 %v432_v35, %v431_v34  ;;  %v434_v39 = vld [vmem:[#allocation5 + $0xa8] sm:$0xff]  ;;  %v435_v41 = vld [vmem:[#allocation5 + $0xb0] sm:$0xff]  ;;  %v436_v42 = vld [vmem:[#allocation5 + $0xb8] sm:$0xff]  ;;  %p963_p6 = scmp.ne.s32.totalorder %s1245_s8, %s962_s6  ;;  %s966_s21 = sshll.u32 %s1038_s19, 4  ;;  %s967_s21 = int_to_ptr.vmem [resolvable:$false] %s966_s21 }
  0x5e   : > { %818 = vmatprep.subr.bf16.mxu0 %v817_v15  ;;  %752 = vmatprep.mubr.msk.f32.mxu1 %vm269_vm0, %v268_v23  ;;  %v833_v40 = vpack.c.bf16 %v434_v39, %v433_v38  ;;  %v837_v43 = vpack.c.bf16 %v436_v42, %v435_v41  ;;  %v699_v47 = vld [vmem:[%s1289_s2] ss:$0 sm:$0xff]  ;;  %s968_s23 = scalar_lea.vmem %s967_s21, 64  ;;  %p969_p13 = scmp.lt.s32.totalorder %s1245_s8, %s967_s21 }
  0x5f   : > { %p964_p8 = pnand %p963_p6, %p1158_p12  ;;  %p970_p3 = scmp.lt.s32.totalorder %s968_s23, %s962_s6 }
  0x60   : > { %800 = vmatpush3.bf16.msra.mxu1 %v797_v20 }
  0x61   : > { %820 = vmatpush3.bf16.msra.mxu0 %v817_v15  ;;  %802 = vmatprep.subr.bf16.mxu1 %v801_v24  ;;  %p965_p10 = pneg %p964_p8  ;;  %p971_p7 = por %p970_p3, %p969_p13 }
  0x62   : > { %822 = vmatprep.subr.bf16.mxu0 %v821_v25 }
  0x63   : > { %p972_p9 = pnand %p971_p7, %p965_p10 }
  0x64   : > { %804 = vmatpush3.bf16.msra.mxu1 %v801_v24 }
  0x65   : > { %824 = vmatpush3.bf16.msra.mxu0 %v821_v25  ;;  %806 = vmatprep.subr.bf16.mxu1 %v805_v30 }
  0x66   : > { %826 = vmatprep.subr.bf16.mxu0 %v825_v32 }
  0x68   : > { %772 = vmatmul.mubr.msk.f32.vlgmr.msra.gmra.mrb[0].mxu0 %vm269_vm0, %v245_v13  ;;  %808 = vmatpush3.bf16.msra.mxu1 %v805_v30 }
  0x69   : > { %828 = vmatpush3.bf16.msra.mxu0 %v825_v32  ;;  %790 = vmatprep.mubr.msk.f32.mxu0 %vm269_vm0, %v440_v37 }
  0x6a   : > { %830 = vmatprep.subr.bf16.mxu0 %v829_v36 }
  0x6b   : > { %753 = vmatmul.mubr.msk.f32.vlgmr.msra.gmra.mrb[0].mxu1 %vm269_vm0, %v267_v18 }
  0x6d   : > { %832 = vmatpush3.bf16.msra.mxu0 %v829_v36 }
  0x6e   : > { %834 = vmatprep.subr.bf16.mxu0 %v833_v40 }
  0x71   : > { %836 = vmatpush3.bf16.msra.mxu0 %v833_v40 }
  0x72   : > { %838 = vmatprep.subr.bf16.mxu0 %v837_v43 }
  0x75   : > { %840 = vmatpush3.bf16.msra.mxu0 %v837_v43 }
  0x78   : > { %791 = vmatmul.mubr.msk.f32.vlgmr.msra.gmra.mrb[0].mxu0 %vm269_vm0, %v439_v33 }
 0x13e   : > { %v754_v44 = vpop.f32.mrb[0].mxu1 }
 0x13f   : > { %v340_v45 = vpop.f32.mrb[1].mxu1 }
 0x14b   : > { %v792_v46 = vpop.f32.mrb[0].mxu0 }
 0x14c   : > { %v841_v48 = vadd.f32 %v792_v46, %v754_v44  ;;  %v511_v49 = vpop.f32.mrb[1].mxu0 }
 0x14d   : > { %v842_v50 = vadd.f32 %v511_v49, %v340_v45 }
 0x14e   : > { %v530_v51 = vadd.f32 %v841_v48, %v699_v47 }
 0x14f   : > { %v529_v52 = vadd.f32 %v842_v50, %v699_v47 }
 0x150   : > { %532 = vst [vmem:[%s243_s29 + $0x8] sm:$0x3f] %v530_v51  ;;  %v533_v53 = vsel %vm437_vm2, %v530_v51, 0.0  ;;  %v543_v54 = vmul.f32 %v530_v51, %v530_v51 }
 0x151   : > { %531 = vst [vmem:[%s243_s29] sm:$0xff] %v529_v52  ;;  %v534_v55 = vadd.f32 %v533_v53, %v529_v52  ;;  %v542_v56 = vmul.f32 %v529_v52, %v529_v52 }
 0x152   : > { %v544_v57 = vsel %vm437_vm2, %v543_v54, 0.0 }
 0x153   : > { %v535_v58 = vrot.slane %v534_v55, 4  ;;  %v545_v59 = vadd.f32 %v544_v57, %v542_v56 }
 0x155   : > { %v536_v60 = vadd.f32 %v535_v58, %v534_v55  ;;  %v546_v61 = vrot.slane %v545_v59, 4 }
 0x157   : > { %v537_v62 = vrot.slane %v536_v60, 2  ;;  %v547_v63 = vadd.f32 %v546_v61, %v545_v59 }
 0x159   : > { %v538_v0 = vadd.f32 %v537_v62, %v536_v60  ;;  %v548_v1 = vrot.slane %v547_v63, 2 }
 0x15b   : > { %v539_v2 = vrot.slane %v538_v0, 1  ;;  %v549_v3 = vadd.f32 %v548_v1, %v547_v63 }
 0x15d   : > { %v540_v4 = vadd.f32 %v539_v2, %v538_v0  ;;  %v550_v5 = vrot.slane %v549_v3, 1 }
 0x15f   : > { %541 = vst [vmem:[%s238_s26] sm:$0x1] %v540_v4  ;;  %v551_v6 = vadd.f32 %v550_v5, %v549_v3 }
 0x161   : > { %552 = vst [vmem:[%s238_s26 + $0x1] sm:$0x1] %v551_v6 }
 0x162   : > { %975 = shalt.err (!%p972_p9)
}
 0x163   : > { %s976_s11 = scalar_lea.hbm %s1243_s20, 32  ;;  %s980_s9 = scalar_lea.hbm %s1291_s4, 64 }
 0x164   : > { %p977_p1 = scmp.ne.s32.totalorder %s1243_s20, %s976_s11  ;;  %p981_p2 = scmp.lt.u32.totalorder %s1243_s20, %s1291_s4 }
 0x165   : > { %p982_p11 = scmp.lt.u32.totalorder %s980_s9, %s976_s11  ;;  %p984_p6 = scmp.lt.u32.totalorder %s976_s11, %s1243_s20 }
 0x166   : > { %p978_p0 = pnand %p977_p1, %p1158_p12 }
 0x167   : > { %p983_p4 = por %p982_p11, %p981_p2 }
 0x168   : > { %p979_p5 = pneg %p978_p0 }
 0x169   : > { %p985_p8 = por %p984_p6, %p983_p4 }
 0x16b   : > { %p986_p10 = pnand %p985_p8, %p979_p5 }
 0x16d   : > { %989 = shalt.err (!%p986_p10)
}
 0x16e   : > { %851 = dma.vmem_to_hbm [thread:$0]  (%p1158_p12), %s1245_s8, 32, %s1243_s20, %s559_s5  }
 0x16f PF: > { %s595_s10 = sand.u32 1, %s1020_s15   ;;  %p1306_p13 = scmp.ne.s32.totalorder %s1296_s22, 0 }
 0x170   : > { %p1307_p3 = scmp.ge.s32.totalorder %s1032_s18, 2  ;;  %s596_s7 = scalar_lea.sflag [#allocation4], %s595_s10 }
 0x172   : > { %p862_p7 = pnand %p1307_p3, %p1306_p13 }
 0x174   : > { %1015 = dma.done.wait (!%p862_p7), %s596_s7, 32  }
 0x175   : > { %1017 = vsyncadd (!%p862_p7), %s596_s7, 4294967264  ;;  %p19_p9 = scmp.ge.s32.totalorder %s1120_s27, 4   ;;  %s1308_s15 = smov %s1024_s16 }
 0x176   : > { %s1309_s16 = smov %s1028_s17  ;;  %s1310_s17 = smov %s1154_s24 }
 0x177   : > { %s1311_s18 = smov %s1120_s27  ;;  %21 = sbr.rel (!%p19_p9) target bundleno = 6 (0x6), region = 95 }
 0x17e   :  { %601 = vsyncpa [#allocation3], 1 }
 0x17f   :  { %603 = vsyncpa [#allocation3 + $0x1], 1 }
 0x180   :  { %604 = vsyncpa [#allocation6], 1 }
 0x181   :  { %605 = vsyncpa [#allocation4], 1 }
 0x182   :  { %607 = vsyncpa [#allocation4 + $0x1], 1 }

</bundles_post_ra>
